<compile_context>
chip_gen: v5e
topology: v5e:2x2
jax: 0.10.0
libtpu: 0.0.40
codegen_flags: <defaults>
</compile_context>

<pallas_src>
import jax
import jax.numpy as jnp
from jax.experimental import pallas as pl
from jax.experimental.pallas import tpu as pltpu

_LANES = 128
_SUBLANES = 8
_LANE_BLOCK = _SUBLANES * _LANES  # 1024: minimal (8,128)-aligned 1D tile
# Double-buffered (input + output) VMEM budget for the pipeline.
_PIPELINE_BUDGET_BYTES = 24 * 1024 * 1024
_VMEM_LIMIT_BYTES = 32 * 1024 * 1024


def _ste_kernel(x_ref, o_ref):
    # One vcmp + one convert per vreg; VALU nowhere near saturated -> no body
    # micro-optimization needed (kernel is HBM bound).
    o_ref[...] = (x_ref[...] > 0).astype(o_ref.dtype)


def _ste_forward(x: jax.Array) -> jax.Array:
    orig_shape = x.shape
    n = x.size
    if n == 0:
        return jnp.zeros(orig_shape, jnp.float32)

    in_bytes = jnp.dtype(x.dtype).itemsize
    # block_elems such that 2 * (in_block + out_block) <= pipeline budget.
    max_block_elems = max(
        _LANE_BLOCK, _PIPELINE_BUDGET_BYTES // (2 * (in_bytes + 4))
    )

    cost = pl.CostEstimate(
        flops=n, transcendentals=0, bytes_accessed=n * (in_bytes + 4)
    )
    cparams = pltpu.CompilerParams(
        dimension_semantics=("parallel",),
        vmem_limit_bytes=_VMEM_LIMIT_BYTES,
    )

    # ---- lane-dense 2D fast path (free contiguous reshape, no padding) -----
    width = 0
    for w in (8192, 4096, 2048, 1024, 512, 256, 128):
        if n % w == 0:
            width = w
            break

    if width:
        rows = n // width
        x2d = x.reshape(rows, width)
        max_block_rows = max(
            _SUBLANES, (max_block_elems // width) // _SUBLANES * _SUBLANES
        )
        if rows <= max_block_rows:
            tile_rows = rows  # single block == full array dims
        else:
            tile_rows = max_block_rows  # multiple of 8; width multiple of 128
        grid = (pl.cdiv(rows, tile_rows),)  # ragged tail write-clipped by Pallas

        out2d = pl.pallas_call(
            _ste_kernel,
            out_shape=jax.ShapeDtypeStruct((rows, width), jnp.float32),
            grid=grid,
            in_specs=[pl.BlockSpec((tile_rows, width), lambda i: (i, 0))],
            out_specs=pl.BlockSpec((tile_rows, width), lambda i: (i, 0)),
            compiler_params=cparams,
            cost_estimate=cost,
        )(x2d)
        return out2d.reshape(orig_shape)

    # ---- ragged path: flat 1D view, cdiv grid, NO padding, NO re-slice -----
    x1d = x.reshape(-1)
    if n < _LANE_BLOCK:
        tile = n  # single full-extent block is always legal
    else:
        tile = min(max_block_elems // _LANE_BLOCK, n // _LANE_BLOCK) * _LANE_BLOCK
    grid = (pl.cdiv(n, tile),)  # partial tail block is write-clipped by Pallas

    out1d = pl.pallas_call(
        _ste_kernel,
        out_shape=jax.ShapeDtypeStruct((n,), jnp.float32),
        grid=grid,
        in_specs=[pl.BlockSpec((tile,), lambda i: (i,))],
        out_specs=pl.BlockSpec((tile,), lambda i: (i,)),
        compiler_params=cparams,
        cost_estimate=cost,
    )(x1d)
    return out1d.reshape(orig_shape)


@jax.custom_vjp
def straight_through_estimator(x: jax.Array) -> jax.Array:
    """Forward of StraightThroughEstimator: (x > 0).astype(float32)."""
    return _ste_forward(x)


def _ste_vjp_fwd(x):
    # Zero-size residual only to remember the primal dtype for the cotangent.
    return _ste_forward(x), jnp.zeros((0,), x.dtype)


def _ste_vjp_bwd(res, g):
    # PyTorch STEFunction.backward: F.hardtanh(grad_output) == clip to [-1, 1].
    return (jnp.clip(g, -1.0, 1.0).astype(res.dtype),)


straight_through_estimator.defvjp(_ste_vjp_fwd, _ste_vjp_bwd)


if __name__ == "__main__":
    key = jax.random.PRNGKey(0)
    k1, k2, k3 = jax.random.split(key, 3)

    # Primary check: small NCHW-like input (lane-dense 2D fast path).
    x = jax.random.normal(key, (2, 4, 16, 16), dtype=jnp.float32)
    y = jax.block_until_ready(straight_through_estimator(x))
    y_ref = (x > 0).astype(jnp.float32)
    assert y.shape == x.shape
    assert y.dtype == jnp.float32
    assert bool(jnp.all(y == y_ref))

    # Ragged size, smaller than one (8,128) tile: single full-extent 1D block.
    x_ragged = jax.random.normal(k1, (1000,), dtype=jnp.float32)
    y_ragged = jax.block_until_ready(straight_through_estimator(x_ragged))
    assert bool(jnp.all(y_ragged == (x_ragged > 0).astype(jnp.float32)))

    # Ragged size with a write-clipped partial tail block (cdiv 1D grid).
    x_tail = jax.random.normal(k2, (5003,), dtype=jnp.float32)
    y_tail = jax.block_until_ready(straight_through_estimator(x_tail))
    assert bool(jnp.all(y_tail == (x_tail > 0).astype(jnp.float32)))

    # Native-dtype read path (cast done inside the kernel).
    x_bf16 = jax.random.normal(k3, (2, 4, 16, 16), dtype=jnp.bfloat16)
    y_bf16 = jax.block_until_ready(straight_through_estimator(x_bf16))
    assert y_bf16.dtype == jnp.float32
    assert bool(jnp.all(y_bf16 == (x_bf16 > 0).astype(jnp.float32)))

    # Backward: F.hardtanh(grad_output) -> grad of sum is all ones.
    g = jax.block_until_ready(
        jax.grad(lambda v: straight_through_estimator(v).sum())(x)
    )
    assert g.dtype == x.dtype
    assert bool(jnp.all(g == jnp.ones_like(x)))

    print("KERNEL_OK")
</pallas_src>

<mosaic_0001>
module attributes {stable_mosaic.version = 11 : i64} {
  func.func @_ste_kernel(%arg0: i32, %arg1: memref<1x2048xf32, #tpu.memory_space<vmem>>, %arg2: memref<1x2048xf32, #tpu.memory_space<vmem>>) attributes {dimension_semantics = [#tpu.dimension_semantics<parallel>], iteration_bounds = array<i64: 1>, scalar_prefetch = 0 : i64, scratch_operands = 0 : i64, tpu.core_type = #tpu.core_type<tc>, window_params = [{transform_indices = @transform_0, window_bounds = array<i64: 1, 2048>}, {transform_indices = @transform_1, window_bounds = array<i64: 1, 2048>}]} {
    %c0 = arith.constant 0 : index
    %c0_0 = arith.constant 0 : index
    %0 = vector.load %arg1[%c0, %c0_0] : memref<1x2048xf32, #tpu.memory_space<vmem>>, vector<1x2048xf32>
    %cst = arith.constant 0.000000e+00 : f32
    %1 = vector.broadcast %cst : f32 to vector<1x2048xf32>
    %2 = arith.cmpf ogt, %0, %1 : vector<1x2048xf32>
    %3 = arith.extui %2 : vector<1x2048xi1> to vector<1x2048xi32>
    %4 = arith.sitofp %3 : vector<1x2048xi32> to vector<1x2048xf32>
    %c0_1 = arith.constant 0 : index
    %c0_2 = arith.constant 0 : index
    %5 = vector.load %arg2[%c0_1, %c0_2] : memref<1x2048xf32, #tpu.memory_space<vmem>>, vector<1x2048xf32>
    tpu.vector_store %arg2[%c0_1, %c0_2], %4 {strides = array<i32>} : memref<1x2048xf32, #tpu.memory_space<vmem>>, vector<1x2048xf32>,
    return
  }
  func.func @transform_0(%arg0: i32) -> (i32, i32) {
    %c0_i32 = arith.constant 0 : i32
    %c0_i32_0 = arith.constant 0 : i32
    return %arg0, %c0_i32 : i32, i32
  }
  func.func @transform_1(%arg0: i32) -> (i32, i32) {
    %c0_i32 = arith.constant 0 : i32
    %c0_i32_0 = arith.constant 0 : i32
    return %arg0, %c0_i32 : i32, i32
  }
}

</mosaic_0001>

<bundles_post_ra>
// kernel: tpu_custom_call.1
= control target key start
LH: loop header
LB: loop body
LE: loop exit
PB: predicated region body
PF: predicated region fallthrough
CT: control target
= control target key end

     0   :  { %6 = vsyncpa [#allocation3], 0  ;;  %s126_s0 = inlined_call_operand.hbm [shape: f32[1,2048], index: 0, kind: input, shape index: {}]   ;;  %s127_s1 = inlined_call_operand.hbm [shape: f32[1,2048], index: 1, kind: output, shape index: {}]  }
   0x1   :  { %7 = vsyncpa [#allocation4], 0  ;;  %s13_s8 = sshll.u32 %s126_s0, 4  ;;  %s107_s9 = smov [#allocation2]   ;;  %s14_s8 = int_to_ptr.hbm [resolvable:$true] %s13_s8 }
   0x2   :  { %s15_s10 = sshll.u32 %s107_s9, 4  ;;  %s16_s10 = int_to_ptr.vmem [resolvable:$true] %s15_s10 }
   0x3   :  { %18 = dma.hbm_to_vmem [thread:$0]  %s14_s8, 256, %s16_s10, [#allocation3]  }
   0x4   :  { %103 = dma.done.wait [#allocation3], 256  }
   0x5   :  { %104 = vsyncadd [#allocation3], 4294967040  ;;  %s108_s11 = smov [#allocation5]   ;;  %s40_s15 = sshll.u32 %s127_s1, 4  ;;  %v23_v0 = vld [vmem:[#allocation2] sm:$0xff]  ;;  %v24_v1 = vld [vmem:[#allocation2 + $0x8] sm:$0xff]  ;;  %s41_s15 = int_to_ptr.hbm [resolvable:$true] %s40_s15 }
   0x6   :  { %s38_s12 = sshll.u32 %s108_s11, 4  ;;  %vm25_vm0 = vcmp.gt.f32.partialorder %v23_v0, 0.0  ;;  %vm26_vm1 = vcmp.gt.f32.partialorder %v24_v1, 0.0  ;;  %v109_v2 = vmov 0.0   ;;  %s39_s12 = int_to_ptr.vmem [resolvable:$true] %s38_s12 }
   0x7   :  { %v50_v3 = vsel %vm25_vm0, 1.0, %v109_v2  ;;  %v51_v4 = vsel %vm26_vm1, 1.0, %v109_v2 }
   0x8   :  { %31 = vst [vmem:[#allocation5] sm:$0xff] %v50_v3 }
   0x9   :  { %32 = vst [vmem:[#allocation5 + $0x8] sm:$0xff] %v51_v4 }
   0xa   :  { %43 = dma.vmem_to_hbm [thread:$0]  %s39_s12, 256, %s41_s15, [#allocation4]  }
   0xb   :  { %105 = dma.done.wait [#allocation4], 256  }
   0xc   :  { %106 = vsyncadd [#allocation4], 4294967040 }
   0xd   :  { %48 = vsyncpa [#allocation3], 1 }
   0xe   :  { %49 = vsyncpa [#allocation4], 1 }

</bundles_post_ra>
